<compile_context>
chip_gen: v7x
topology: tpu7x:2x2x1
jax: 0.10.0
libtpu: 0.0.40
codegen_flags: <defaults>
</compile_context>

<pallas_src>
import functools
import math

import jax
import jax.numpy as jnp
from jax import lax
from jax.experimental import pallas as pl
from jax.experimental.pallas import tpu as pltpu


# --------------------------------------------------------------------------
# VMEM sizing helpers
# --------------------------------------------------------------------------
def _vmem_capacity_bytes():
    try:
        info = pltpu.get_tpu_info()
        cap = getattr(info, "vmem_capacity_bytes", None)
        if cap:
            return int(cap)
    except Exception:
        pass
    return 64 * 1024 * 1024  # conservative default (v7x physical VMEM)


def _pick_row_tile(n, din, dout, dk, budget_bytes, cap_bytes):
    """Rows of adj per grid step for the streamed (two-pass) path."""
    if n <= 256:
        return n  # one row tile covers the batch (block dim == full dim)

    def vmem_use(tm):
        return 4 * (2 * tm * n                  # adj row slab, double-buffered
                    + 2 * n * dk                # batch-resident scaled features
                    + 2 * tm * dk               # identity-term tile (fallback path)
                    + 2 * tm * dout             # output tile, double-buffered
                    + 2 * (din * dout + dout)   # weight + bias, double-buffered
                    + tm * (n + dk + dout))     # in-kernel temporaries

    tm = 2048 if cap_bytes >= 96 * 1024 * 1024 else 1024
    while tm > 8 and vmem_use(tm) > budget_bytes:
        tm //= 2
    return n if tm >= n else max(8, tm)


# --------------------------------------------------------------------------
# Kernels
# --------------------------------------------------------------------------
def _gcn_fused_kernel(adj_ref, x_ref, w_ref, b_ref, o_ref, *,
                      project_first, matmul_dtype):
    # Whole (N, N) adjacency of one batch element is resident in VMEM.
    a = jnp.maximum(adj_ref[0], 0.0)                              # clamp only
    deg = jnp.sum(a, axis=-1, keepdims=True) + (1.0 + 1e-5)       # +1 = self loop
    dis = lax.rsqrt(deg)                                          # EUP; deg >= 1
    xs = dis * x_ref[0].astype(jnp.float32)                       # column scaling on x
    if project_first:                                             # fold W early
        xs = jnp.dot(xs, w_ref[...], preferred_element_type=jnp.float32)
    h = jnp.dot(a.astype(matmul_dtype), xs.astype(matmul_dtype),
                preferred_element_type=jnp.float32)
    h = (h + xs) * dis                                            # identity term + row scale
    if not project_first:
        h = jnp.dot(h, w_ref[...], preferred_element_type=jnp.float32)
    o_ref[0] = (h + b_ref[0]).astype(o_ref.dtype)


def _prep_kernel(adj_ref, x_ref, *refs, project_first):
    # adj_ref: (1, TM, N)   x_ref: (1, TM, Din)
    # refs = ([w_ref], feat_ref); feat_ref: (1, TM, Dk)
    feat_ref = refs[-1]
    a = jnp.maximum(adj_ref[0], 0.0)
    deg = jnp.sum(a, axis=-1, keepdims=True) + (1.0 + 1e-5)
    dis = lax.rsqrt(deg)
    xs = dis * x_ref[0].astype(jnp.float32)                       # column scaling moved onto x
    if project_first:                                             # Dout tiles < Din tiles
        w_ref = refs[0]
        xs = jnp.dot(xs, w_ref[...], preferred_element_type=jnp.float32)
    feat_ref[0] = xs.astype(feat_ref.dtype)


def _gcn_kernel(adj_ref, feat_full_ref, *refs,
                project_first, slice_identity, tm, matmul_dtype):
    # adj_ref: (1, TM, N) streamed    feat_full_ref: (1, N, Dk) batch-resident
    # refs = ([feat_tile_ref], [w_ref], b_ref, o_ref)
    idx = 0
    feat_tile_ref = None
    if not slice_identity:
        feat_tile_ref = refs[idx]; idx += 1
    w_ref = None
    if not project_first:
        w_ref = refs[idx]; idx += 1
    b_ref = refs[idx]; idx += 1
    o_ref = refs[idx]

    a = jnp.maximum(adj_ref[0], 0.0)                              # (TM, N); no +I, no col scaling
    deg = jnp.sum(a, axis=-1, keepdims=True) + (1.0 + 1e-5)       # recompute row degree here
    dis = lax.rsqrt(deg)                                          # no HBM round-trip for dis

    if slice_identity:
        row0 = pl.multiple_of(pl.program_id(1) * tm, tm)
        xs_tile = feat_full_ref[0, pl.ds(row0, tm), :]            # identity-term rows from the
    else:                                                         # already-resident feat block
        xs_tile = feat_tile_ref[0]

    h = jnp.dot(a.astype(matmul_dtype), feat_full_ref[0].astype(matmul_dtype),
                preferred_element_type=jnp.float32)
    h = (h + xs_tile.astype(jnp.float32)) * dis                   # identity term + D^{-1/2} rows
    if not project_first:
        h = jnp.dot(h, w_ref[...], preferred_element_type=jnp.float32)
    o_ref[0] = (h + b_ref[0]).astype(o_ref.dtype)


# --------------------------------------------------------------------------
# Wrapper
# --------------------------------------------------------------------------
def graph_conv(x, adj, weight, bias, *, matmul_dtype=jnp.float32,
               force_tiled=False, row_tile=None, project_first=None):
    B, N, Din = x.shape
    Dout = weight.shape[-1]
    cap = _vmem_capacity_bytes()
    bias2d = bias.reshape(1, Dout)

    # Fused single-pass path when one batch element fits comfortably in VMEM.
    fused_bytes = 4 * (3 * N * N + 2 * N * Din + 2 * N * Dout
                       + 2 * (Din * Dout + Dout) + N * (Din + Dout))
    use_fused = (not force_tiled) and fused_bytes <= int(cap * 0.5)

    if project_first is None:
        ti = -(-Din // 128)   # MXU column tiles (128-lane granularity)
        to = -(-Dout // 128)
        if to < ti:
            project_first = True
        elif to > ti:
            project_first = False
        else:
            # Same MXU cost either way; fold early only if it meaningfully
            # shrinks the resident/streamed feature block on the tiled path.
            project_first = (not use_fused) and (2 * Dout <= Din)

    vmem_limit = int(cap * 0.75)

    if use_fused:
        return pl.pallas_call(
            functools.partial(_gcn_fused_kernel, project_first=project_first,
                              matmul_dtype=matmul_dtype),
            out_shape=jax.ShapeDtypeStruct((B, N, Dout), x.dtype),
            grid_spec=pl.GridSpec(
                grid=(B,),
                in_specs=[
                    pl.BlockSpec((1, N, N), lambda b: (b, 0, 0)),     # adj (full per batch)
                    pl.BlockSpec((1, N, Din), lambda b: (b, 0, 0)),   # x
                    pl.BlockSpec((Din, Dout), lambda b: (0, 0)),      # weight (resident)
                    pl.BlockSpec((1, Dout), lambda b: (0, 0)),        # bias (resident)
                ],
                out_specs=pl.BlockSpec((1, N, Dout), lambda b: (b, 0, 0)),
            ),
            compiler_params=pltpu.CompilerParams(
                dimension_semantics=("parallel",),
                vmem_limit_bytes=vmem_limit),
        )(adj, x, weight, bias2d)

    # ---- streamed two-pass path (adj does not fit / forced) ----
    Dk = Dout if project_first else Din
    feat_dtype = matmul_dtype                 # bf16 halves feat HBM traffic when requested
    tm = row_tile if row_tile is not None else _pick_row_tile(
        N, Din, Dout, Dk, int(cap * 0.55), cap)
    tm = min(tm, N)
    slice_identity = (N % tm == 0)            # in-kernel slice only when tiles are exact
    grid = (B, pl.cdiv(N, tm))
    cparams = pltpu.CompilerParams(
        dimension_semantics=("parallel", "parallel"),
        vmem_limit_bytes=vmem_limit)

    # --- pass 1: column-scaled (optionally projected) features ---
    prep_in_specs = [
        pl.BlockSpec((1, tm, N), lambda b, m: (b, m, 0)),             # adj row slab
        pl.BlockSpec((1, tm, Din), lambda b, m: (b, m, 0)),           # x row tile
    ]
    prep_args = [adj, x]
    if project_first:
        prep_in_specs.append(pl.BlockSpec((Din, Dout), lambda b, m: (0, 0)))
        prep_args.append(weight)

    feat = pl.pallas_call(
        functools.partial(_prep_kernel, project_first=project_first),
        out_shape=jax.ShapeDtypeStruct((B, N, Dk), feat_dtype),
        grid_spec=pl.GridSpec(
            grid=grid,
            in_specs=prep_in_specs,
            out_specs=pl.BlockSpec((1, tm, Dk), lambda b, m: (b, m, 0)),
        ),
        compiler_params=cparams,
    )(*prep_args)

    # --- pass 2: y = D^{-1/2} (clamp(adj) @ feat + feat) [@ W] + b ---
    p2_specs = [
        pl.BlockSpec((1, tm, N), lambda b, m: (b, m, 0)),             # adj row slab (streamed)
        pl.BlockSpec((1, N, Dk), lambda b, m: (b, 0, 0)),             # feat: resident per batch
    ]
    p2_args = [adj, feat]
    if not slice_identity:
        p2_specs.append(pl.BlockSpec((1, tm, Dk), lambda b, m: (b, m, 0)))
        p2_args.append(feat)
    if not project_first:
        p2_specs.append(pl.BlockSpec((Din, Dout), lambda b, m: (0, 0)))
        p2_args.append(weight)
    p2_specs.append(pl.BlockSpec((1, Dout), lambda b, m: (0, 0)))
    p2_args.append(bias2d)

    return pl.pallas_call(
        functools.partial(_gcn_kernel, project_first=project_first,
                          slice_identity=slice_identity, tm=tm,
                          matmul_dtype=matmul_dtype),
        out_shape=jax.ShapeDtypeStruct((B, N, Dout), x.dtype),
        grid_spec=pl.GridSpec(
            grid=grid,
            in_specs=p2_specs,
            out_specs=pl.BlockSpec((1, tm, Dout), lambda b, m: (b, m, 0)),
        ),
        compiler_params=cparams,
    )(*p2_args)


# --------------------------------------------------------------------------
# Pure-JAX reference mirroring the PyTorch forward
# --------------------------------------------------------------------------
def graph_conv_ref(x, adj, weight, bias):
    B, N, _ = adj.shape
    a = jnp.maximum(adj, 0.0)
    a = a + jnp.eye(N, dtype=a.dtype)[None]
    deg = a.sum(-1) + 1e-5
    dis = deg ** -0.5
    dis = jnp.where(jnp.isinf(dis), 0.0, dis)[..., None]
    a_norm = a * dis * jnp.swapaxes(dis, 1, 2)
    y = jnp.einsum("bij,bjd->bid", a_norm, x)
    y = jnp.einsum("bid,de->bie", y, weight)
    return y + bias


if __name__ == "__main__":
    key = jax.random.PRNGKey(0)
    kx, kadj, kw, kx2, kadj2, kw2 = jax.random.split(key, 6)
    gain = math.sqrt(2.0 / (1.0 + 0.2 ** 2))   # xavier_uniform_ gain for leaky_relu(0.2)

    # Example 1: batch=2, nodes=16, input_dim=16, output_dim=32 (fused path).
    B, N, Din, Dout = 2, 16, 16, 32
    x = jax.random.normal(kx, (B, N, Din), dtype=jnp.float32)
    adj = jax.random.normal(kadj, (B, N, N), dtype=jnp.float32)   # negatives exercise clamp
    bound = gain * math.sqrt(6.0 / (Din + Dout))
    weight = jax.random.uniform(kw, (Din, Dout), dtype=jnp.float32,
                                minval=-bound, maxval=bound)
    bias = jnp.zeros((Dout,), dtype=jnp.float32)

    ref = graph_conv_ref(x, adj, weight, bias)
    out = jax.block_until_ready(graph_conv(x, adj, weight, bias))
    assert out.shape == (B, N, Dout)
    assert jnp.allclose(out, ref, atol=1e-4, rtol=1e-4)

    # Example 2: Dout < Din but same MXU lane-tile count -> no early W fold (fused).
    B2, N2, Din2, Dout2 = 2, 24, 32, 16
    x2 = jax.random.normal(kx2, (B2, N2, Din2), dtype=jnp.float32)
    adj2 = jax.random.normal(kadj2, (B2, N2, N2), dtype=jnp.float32)
    bound2 = gain * math.sqrt(6.0 / (Din2 + Dout2))
    weight2 = jax.random.uniform(kw2, (Din2, Dout2), dtype=jnp.float32,
                                 minval=-bound2, maxval=bound2)
    bias2 = jnp.zeros((Dout2,), dtype=jnp.float32)

    ref2 = graph_conv_ref(x2, adj2, weight2, bias2)
    out2 = jax.block_until_ready(graph_conv(x2, adj2, weight2, bias2))
    assert out2.shape == (B2, N2, Dout2)
    assert jnp.allclose(out2, ref2, atol=1e-4, rtol=1e-4)

    # Example 3: streamed two-pass path, exact row tiles (in-kernel identity slice).
    out3 = jax.block_until_ready(
        graph_conv(x, adj, weight, bias, force_tiled=True, row_tile=8))
    assert jnp.allclose(out3, ref, atol=1e-4, rtol=1e-4)

    # Example 4: streamed path with W folded into the prep pass (project_first).
    out4 = jax.block_until_ready(
        graph_conv(x2, adj2, weight2, bias2, force_tiled=True, row_tile=8,
                   project_first=True))
    assert jnp.allclose(out4, ref2, atol=1e-4, rtol=1e-4)

    # Example 5: streamed path with a non-dividing row tile (BlockSpec identity
    # tile fallback, edge-tile masking).
    out5 = jax.block_until_ready(
        graph_conv(x2, adj2, weight2, bias2, force_tiled=True, row_tile=16,
                   project_first=False))
    assert jnp.allclose(out5, ref2, atol=1e-4, rtol=1e-4)

    # Example 6: bf16 MXU path (fp32 accumulation) — looser tolerance.
    out6 = jax.block_until_ready(
        graph_conv(x, adj, weight, bias, matmul_dtype=jnp.bfloat16))
    assert jnp.allclose(out6, ref, atol=7e-2, rtol=7e-2)

    print("KERNEL_OK")
</pallas_src>

<mosaic_0001>
module attributes {stable_mosaic.version = 11 : i64} {
  func.func @_gcn_fused_kernel(%arg0: i32, %arg1: memref<1x16x16xf32, #tpu.memory_space<vmem>>, %arg2: memref<1x16x16xf32, #tpu.memory_space<vmem>>, %arg3: memref<16x32xf32, #tpu.memory_space<vmem>>, %arg4: memref<1x32xf32, #tpu.memory_space<vmem>>, %arg5: memref<1x16x32xf32, #tpu.memory_space<vmem>>) attributes {dimension_semantics = [#tpu.dimension_semantics<parallel>], iteration_bounds = array<i64: 2>, scalar_prefetch = 0 : i64, scratch_operands = 0 : i64, tpu.core_type = #tpu.core_type<tc>, window_params = [{transform_indices = @transform_0, window_bounds = array<i64: 1, 16, 16>}, {transform_indices = @transform_1, window_bounds = array<i64: 1, 16, 16>}, {pipeline_mode = #tpu.pipeline_mode<synchronous>, transform_indices = @transform_2, window_bounds = array<i64: 16, 32>}, {pipeline_mode = #tpu.pipeline_mode<synchronous>, transform_indices = @transform_3, window_bounds = array<i64: 1, 32>}, {transform_indices = @transform_4, window_bounds = array<i64: 1, 16, 32>}]} {
    %c0 = arith.constant 0 : index
    %c0_0 = arith.constant 0 : index
    %c0_1 = arith.constant 0 : index
    %0 = vector.load %arg1[%c0, %c0_0, %c0_1] : memref<1x16x16xf32, #tpu.memory_space<vmem>>, vector<1x16x16xf32>
    %1 = vector.shape_cast %0 : vector<1x16x16xf32> to vector<16x16xf32>
    %cst = arith.constant 0.000000e+00 : f32
    %2 = vector.broadcast %cst : f32 to vector<16x16xf32>
    %3 = arith.maximumf %1, %2 : vector<16x16xf32>
    %cst_2 = arith.constant dense<0.000000e+00> : vector<16xf32>
    %4 = vector.multi_reduction <add>, %3, %cst_2 [1] : vector<16x16xf32> to vector<16xf32>
    %5 = vector.shape_cast %4 : vector<16xf32> to vector<16x1xf32>
    %cst_3 = arith.constant 1.000010e+00 : f32
    %6 = vector.broadcast %cst_3 : f32 to vector<16x1xf32>
    %7 = arith.addf %5, %6 : vector<16x1xf32>
    %8 = math.rsqrt %7 : vector<16x1xf32>
    %c0_4 = arith.constant 0 : index
    %c0_5 = arith.constant 0 : index
    %c0_6 = arith.constant 0 : index
    %9 = vector.load %arg2[%c0_4, %c0_5, %c0_6] : memref<1x16x16xf32, #tpu.memory_space<vmem>>, vector<1x16x16xf32>
    %10 = vector.shape_cast %9 : vector<1x16x16xf32> to vector<16x16xf32>
    %11 = vector.broadcast %8 : vector<16x1xf32> to vector<16x16xf32>
    %12 = arith.mulf %11, %10 : vector<16x16xf32>
    %cst_7 = arith.constant dense<0.000000e+00> : vector<16x16xf32>
    %13 = tpu.matmul %3, %12, %cst_7 {dimension_numbers = #tpu.dot_dimension_numbers<[1], [0], [0], [1], [0, 0, 1, 1], [], []>} : vector<16x16xf32>, vector<16x16xf32>, vector<16x16xf32> -> vector<16x16xf32>
    %14 = arith.addf %13, %12 : vector<16x16xf32>
    %15 = vector.broadcast %8 : vector<16x1xf32> to vector<16x16xf32>
    %16 = arith.mulf %14, %15 : vector<16x16xf32>
    %c0_8 = arith.constant 0 : index
    %c0_9 = arith.constant 0 : index
    %17 = vector.load %arg3[%c0_8, %c0_9] : memref<16x32xf32, #tpu.memory_space<vmem>>, vector<16x32xf32>
    %cst_10 = arith.constant dense<0.000000e+00> : vector<16x32xf32>
    %18 = tpu.matmul %16, %17, %cst_10 {dimension_numbers = #tpu.dot_dimension_numbers<[1], [0], [0], [1], [0, 0, 1, 1], [], []>} : vector<16x16xf32>, vector<16x32xf32>, vector<16x32xf32> -> vector<16x32xf32>
    %c0_11 = arith.constant 0 : index
    %c0_12 = arith.constant 0 : index
    %19 = vector.load %arg4[%c0_11, %c0_12] : memref<1x32xf32, #tpu.memory_space<vmem>>, vector<1x32xf32>
    %20 = vector.shape_cast %19 : vector<1x32xf32> to vector<32xf32>
    %21 = vector.shape_cast %20 : vector<32xf32> to vector<1x32xf32>
    %22 = vector.broadcast %21 : vector<1x32xf32> to vector<16x32xf32>
    %23 = arith.addf %18, %22 : vector<16x32xf32>
    %c0_13 = arith.constant 0 : index
    %c0_14 = arith.constant 0 : index
    %c0_15 = arith.constant 0 : index
    %24 = vector.load %arg5[%c0_13, %c0_14, %c0_15] : memref<1x16x32xf32, #tpu.memory_space<vmem>>, vector<1x16x32xf32>
    %25 = vector.shape_cast %24 : vector<1x16x32xf32> to vector<16x32xf32>
    %26 = vector.shape_cast %23 : vector<16x32xf32> to vector<1x16x32xf32>
    tpu.vector_store %arg5[%c0_13, %c0_14, %c0_15], %26 {strides = array<i32>} : memref<1x16x32xf32, #tpu.memory_space<vmem>>, vector<1x16x32xf32>,
    return
  }
  func.func @transform_0(%arg0: i32) -> (i32, i32, i32) {
    %c0_i32 = arith.constant 0 : i32
    %c0_i32_0 = arith.constant 0 : i32
    %c0_i32_1 = arith.constant 0 : i32
    return %arg0, %c0_i32, %c0_i32_0 : i32, i32, i32
  }
  func.func @transform_1(%arg0: i32) -> (i32, i32, i32) {
    %c0_i32 = arith.constant 0 : i32
    %c0_i32_0 = arith.constant 0 : i32
    %c0_i32_1 = arith.constant 0 : i32
    return %arg0, %c0_i32, %c0_i32_0 : i32, i32, i32
  }
  func.func @transform_2(%arg0: i32) -> (i32, i32) {
    %c0_i32 = arith.constant 0 : i32
    %c0_i32_0 = arith.constant 0 : i32
    %c0_i32_1 = arith.constant 0 : i32
    return %c0_i32, %c0_i32_0 : i32, i32
  }
  func.func @transform_3(%arg0: i32) -> (i32, i32) {
    %c0_i32 = arith.constant 0 : i32
    %c0_i32_0 = arith.constant 0 : i32
    %c0_i32_1 = arith.constant 0 : i32
    return %c0_i32, %c0_i32_0 : i32, i32
  }
  func.func @transform_4(%arg0: i32) -> (i32, i32, i32) {
    %c0_i32 = arith.constant 0 : i32
    %c0_i32_0 = arith.constant 0 : i32
    %c0_i32_1 = arith.constant 0 : i32
    return %arg0, %c0_i32, %c0_i32_0 : i32, i32, i32
  }
}

</mosaic_0001>

<bundles_post_ra>
// kernel: tpu_custom_call.1
= control target key start
LH: loop header
LB: loop body
LE: loop exit
PB: predicated region body
PF: predicated region fallthrough
CT: control target
= control target key end

     0   :  { %s1176_s0 = inlined_call_operand.hbm [shape: f32[2,16,16], index: 0, kind: input, shape index: {}]   ;;  %s1177_s1 = inlined_call_operand.hbm [shape: f32[2,16,16], index: 1, kind: input, shape index: {}]   ;;  %s1178_s2 = inlined_call_operand.hbm [shape: f32[16,32], index: 2, kind: input, shape index: {}]   ;;  %s1179_s3 = inlined_call_operand.vmem [shape: f32[1,32], index: 3, kind: input, shape index: {}]   ;;  %s1180_s4 = inlined_call_operand.hbm [shape: f32[2,16,32], index: 4, kind: output, shape index: {}]  }
   0x1   :  { %1188 = sst [smem:[#allocation14_spill]] %s1176_s0 }
   0x2   :  { %1189 = sst [smem:[#allocation15_spill]] %s1178_s2 }
   0x3   :  { %9 = vsyncpa [#allocation3], 0 }
   0x4   :  { %11 = vsyncpa [#allocation3 + $0x1], 0 }
   0x5   :  { %12 = vsyncpa [#allocation6], 0 }
   0x6   :  { %14 = vsyncpa [#allocation6 + $0x1], 0 }
   0x7   :  { %15 = vsyncpa [#allocation4], 0 }
   0x8   :  { %17 = vsyncpa [#allocation4 + $0x1], 0  ;;  %s909_s15 = smov 0   ;;  %s911_s16 = smov 0  }
   0x9   :  { %s913_s17 = smov 0   ;;  %s915_s18 = smov 0  }
   0xa LB: > { %s930_s19 = sadd.s32 4294967295, %s874_s18   ;;  %s584_s20 = sadd.s32 4294967294, %s874_s18   ;;  %s874_s18 = sphi %s915_s18, %s1212_s18   ;;  %s870_s17 = sphi %s913_s17, %s1211_s17   ;;  %s866_s16 = sphi %s911_s16, %s1210_s16   ;;  %s862_s15 = sphi %s909_s15, %s1209_s15  }
   0xb   : > { %p43_p0 = scmp.ne.s32.totalorder %s866_s16, %s862_s15  ;;  %p1181_p1 = scmp.eq.s32.totalorder %s930_s19, 0 }
   0xc   : > { %p141_p3 = scmp.eq.s32.totalorder %s584_s20, 1  ;;  %p585_p5 = scmp.ge.s32.totalorder %s874_s18, 1 }
   0xd   : > { %p939_p4 = por %p1181_p1, %p43_p0  ;;  %p148_p7 = scmp.lt.s32.totalorder %s874_s18, 3 }
   0xe   : > { %p944_p6 = por %p141_p3, %p43_p0  ;;  %s876_s24 = smov [#allocation7]  }
   0xf   : > { %s1190_s21 = scalar_select %p939_p4, 1, 0 }
  0x10   : > { %s1191_s22 = scalar_select %p944_p6, 1, 0 }
  0x11   : > { %p949_p8 = pnand %p585_p5, %p148_p7  ;;  %s160_s25 = sshll.u32 %s876_s24, 4  ;;  %s953_s25 = int_to_ptr.vmem [resolvable:$true] %s160_s25 }
  0x12   : > { %s965_s27 = sadd.s32 1, %s874_s18   ;;  %s30_s28 = sadd.s32 1, %s870_s17 }
  0x13   : > { %s1192_s23 = scalar_select %p949_p8, 1, 0 }
  0x14   : > { %p652_p9 = pneg %p949_p8  ;;  %s27_s29 = ssub.s32 %s874_s18, %s965_s27 }
  0x15   : > { %s1194_s2 = sld [smem:[#allocation15_spill]] }
  0x16   : > { %p960_p11 = pnand %p652_p9, %p1181_p1 }
  0x18   : > { %p714_p13 = pneg %p960_p11 }
  0x1b   : > { %s712_s6 = scalar_lea.hbm %s1194_s2, 256 }
  0x1c   : > { %p713_p12 = scmp.ne.s32.totalorder %s1194_s2, %s712_s6  ;;  %p719_p5 = scmp.lt.u32.totalorder %s712_s6, %s1194_s2 }
  0x1e   : > { %p715_p0 = pnand %p714_p13, %p713_p12 }
  0x20   : > { %p716_p3 = pneg %p715_p0 }
  0x22   : > { %p721_p7 = pnand %p719_p5, %p716_p3 }
  0x24   : > { %724 = shalt.err (!%p721_p7)
}
  0x25   : > { %s725_s11 = scalar_lea.vmem %s953_s25, 256  ;;  %p733_p2 = scmp.lt.s32.totalorder %s953_s25, %s953_s25 }
  0x26   : > { %p726_p9 = scmp.ne.s32.totalorder %s953_s25, %s725_s11  ;;  %p734_p6 = scmp.lt.s32.totalorder %s725_s11, %s725_s11 }
  0x28   : > { %p728_p10 = pnand %p726_p9, %p714_p13  ;;  %p735_p4 = por %p734_p6, %p733_p2 }
  0x2a   : > { %p729_p1 = pneg %p728_p10 }
  0x2c   : > { %p736_p8 = pnand %p735_p4, %p729_p1 }
  0x2e   : > { %739 = shalt.err (!%p736_p8)
}
  0x2f   : > { %s1184_s12 = smov 128   ;;  %s1186_s13 = smov 8  }
  0x30   : > { %655 = dma.hbm_to_vmem [thread:$0]  (!%p960_p11), %s1194_s2, 256, %s953_s25, [#allocation6], %s1184_s12, %s1184_s12, %s1186_s13  }
  0x31   : > { %p28_p1 = scmp.eq.s32.totalorder %s27_s29, 0  ;;  %p37_p2 = scmp.ne.s32.totalorder %s870_s17, %s866_s16 }
  0x32   : > { %p38_p4 = scmp.eq.s32.totalorder %s874_s18, 0  ;;  %p668_p6 = scmp.lt.s32.totalorder %s874_s18, 2 }
  0x33   : > { %s999_s24 = scalar_select %p28_p1, %s870_s17, %s30_s28  }
  0x34   : > { %p39_p8 = por %p38_p4, %p37_p2  ;;  %p1196_p10 = scmp.eq.s32.totalorder %s930_s19, 1 }
  0x35   : > { %1195 = sst [smem:[#allocation13_spill]] %s999_s24  ;;  %s177_s26 = sand.u32 1, %s870_s17  }
  0x36   : > { %p1003_p12 = por %p1196_p10, %p37_p2  ;;  %s609_s5 = sshll.u32 %s874_s18, 8 }
  0x37   : > { %s1009_s6 = sshll.u32 %s177_s26, 4  ;;  %s1198_s0 = sld [smem:[#allocation14_spill]] }
  0x38   : > { %s181_s28 = scalar_lea.vmem [#allocation2], %s1009_s6  ;;  %p1017_p11 = pnand %p668_p6, %p39_p8 }
  0x39   : > { %s188_s29 = sshll.u32 %s181_s28, 4  ;;  %s1026_s14 = scalar_lea.hbm %s1177_s1, %s609_s5  ;;  %s1021_s29 = int_to_ptr.vmem [resolvable:$true] %s188_s29 }
  0x3a   : > { %s1028_s20 = scalar_lea.sflag [#allocation3], %s177_s26  ;;  %p742_p0 = pneg %p1017_p11 }
  0x3d   : > { %s1014_s25 = scalar_lea.hbm %s1198_s0, %s609_s5  ;;  %s745_s12 = scalar_lea.hbm %s1198_s0, 512 }
  0x3e   : > { %s740_s7 = scalar_lea.hbm %s1014_s25, 256  ;;  %p746_p7 = scmp.lt.u32.totalorder %s1014_s25, %s1198_s0 }
  0x3f   : > { %p741_p13 = scmp.ne.s32.totalorder %s1014_s25, %s740_s7  ;;  %p747_p9 = scmp.lt.u32.totalorder %s745_s12, %s740_s7 }
  0x40   : > { %p749_p2 = scmp.lt.u32.totalorder %s740_s7, %s1014_s25 }
  0x41   : > { %p743_p3 = pnand %p742_p0, %p741_p13  ;;  %p748_p1 = por %p747_p9, %p746_p7 }
  0x43   : > { %p744_p5 = pneg %p743_p3  ;;  %p750_p4 = por %p749_p2, %p748_p1 }
  0x45   : > { %p751_p6 = pnand %p750_p4, %p744_p5 }
  0x47   : > { %754 = shalt.err (!%p751_p6)
}
  0x48   : > { %s755_s26 = scalar_lea.vmem %s1021_s29, 256  ;;  %s879_s5 = smov [#allocation2]  }
  0x49   : > { %p756_p8 = scmp.ne.s32.totalorder %s1021_s29, %s755_s26  ;;  %s760_s10 = sshll.u32 %s879_s5, 4  ;;  %s761_s10 = int_to_ptr.vmem [resolvable:$false] %s760_s10 }
  0x4a   : > { %s762_s2 = scalar_lea.vmem %s761_s10, 512  ;;  %p763_p3 = scmp.lt.s32.totalorder %s1021_s29, %s761_s10 }
  0x4b   : > { %p758_p10 = pnand %p756_p8, %p742_p0  ;;  %p764_p7 = scmp.lt.s32.totalorder %s762_s2, %s755_s26 }
  0x4d   : > { %p759_p13 = pneg %p758_p10  ;;  %p765_p9 = por %p764_p7, %p763_p3 }
  0x4f   : > { %p766_p1 = pnand %p765_p9, %p759_p13 }
  0x51   : > { %769 = shalt.err (!%p766_p1)
}
  0x52   : > { %s1200_s12 = smov 8   ;;  %s1201_s13 = smov 128  }
  0x53   : > { %659 = dma.hbm_to_vmem [thread:$0]  (!%p1017_p11), %s1014_s25, 256, %s1021_s29, %s1028_s20, %s1201_s13, %s1201_s13, %s1200_s12  }
  0x54   : > { %s202_s11 = scalar_lea.vmem [#allocation5], %s1009_s6  ;;  %s198_s8 = sand.u32 1, %s874_s18  }
  0x55   : > { %s209_s7 = sshll.u32 %s202_s11, 4  ;;  %s1063_s28 = scalar_lea.sflag [#allocation6], %s198_s8  ;;  %s1061_s7 = int_to_ptr.vmem [resolvable:$true] %s209_s7 }
  0x56   : > { %s770_s26 = scalar_lea.hbm %s1026_s14, 256  ;;  %s775_s2 = scalar_lea.hbm %s1177_s1, 512 }
  0x57   : > { %p771_p5 = scmp.ne.s32.totalorder %s1026_s14, %s770_s26  ;;  %p776_p6 = scmp.lt.u32.totalorder %s1026_s14, %s1177_s1 }
  0x58   : > { %p777_p8 = scmp.lt.u32.totalorder %s775_s2, %s770_s26  ;;  %p779_p13 = scmp.lt.u32.totalorder %s770_s26, %s1026_s14 }
  0x59   : > { %p773_p2 = pnand %p771_p5, %p742_p0 }
  0x5a   : > { %p778_p10 = por %p777_p8, %p776_p6 }
  0x5b   : > { %p774_p4 = pneg %p773_p2 }
  0x5c   : > { %p780_p3 = por %p779_p13, %p778_p10 }
  0x5e   : > { %p781_p7 = pnand %p780_p3, %p774_p4 }
  0x60   : > { %784 = shalt.err (!%p781_p7)
}
  0x61   : > { %s785_s6 = scalar_lea.vmem %s1061_s7, 256  ;;  %s880_s25 = smov [#allocation5]  }
  0x62   : > { %p786_p9 = scmp.ne.s32.totalorder %s1061_s7, %s785_s6  ;;  %s790_s29 = sshll.u32 %s880_s25, 4  ;;  %s791_s29 = int_to_ptr.vmem [resolvable:$false] %s790_s29 }
  0x63   : > { %s792_s0 = scalar_lea.vmem %s791_s29, 512  ;;  %p793_p2 = scmp.lt.s32.totalorder %s1061_s7, %s791_s29 }
  0x64   : > { %p788_p1 = pnand %p786_p9, %p742_p0  ;;  %p794_p6 = scmp.lt.s32.totalorder %s792_s0, %s785_s6 }
  0x66   : > { %p789_p5 = pneg %p788_p1  ;;  %p795_p8 = por %p794_p6, %p793_p2 }
  0x68   : > { %p796_p10 = pnand %p795_p8, %p789_p5 }
  0x6a   : > { %799 = shalt.err (!%p796_p10)
}
  0x6b   : > { %662 = dma.hbm_to_vmem [thread:$0]  (!%p1017_p11), %s1026_s14, 256, %s1061_s7, %s1063_s28, %s1201_s13, %s1201_s13, %s1200_s12  }
  0x6c   : > { %p1202_p0 = scmp.ne.s32.totalorder %s1192_s23, 0 }
  0x6d   : > { %s1095_s24 = sand.u32 (!%p1202_p0), 1, %s866_s16   ;;  %p1203_p4 = scmp.ne.s32.totalorder (!%p1202_p0), %s1190_s21, 0 }
  0x6e   : > { %221 = sbr.rel (%p1202_p0) target bundleno = 743 (0x2e7), region = 36  ;;  %s1098_s20 = sshll.u32 (!%p1202_p0), %s1095_s24, 4 }
  0x6f   : > { %s224_s9 = scalar_lea.sflag (!%p1202_p0), [#allocation3], %s1095_s24  ;;  %s227_s11 = scalar_lea.vmem (!%p1202_p0), [#allocation2], %s1098_s20 }
  0x75   : > { %845 = dma.done.wait (%p1203_p4), %s224_s9, 256  }
  0x76   : > { %847 = vsyncadd (%p1203_p4), %s224_s9, 4294967040  ;;  %s232_s23 = sand.u32 1, %s930_s19   ;;  %s236_s12 = scalar_lea.vmem [#allocation5], %s1098_s20 }
  0x77   : > { %s233_s14 = scalar_lea.sflag [#allocation6], %s232_s23 }
  0x78   : > { %849 = dma.done.wait (%p1203_p4), %s233_s14, 256  }
  0x79   : > { %851 = vsyncadd (%p1203_p4), %s233_s14, 4294967040  ;;  %p1204_p11 = scmp.eq.s32.totalorder %s930_s19, 0 }
  0x7b   : > { %853 = dma.done.wait (%p1204_p11), [#allocation6], 256   ;;  %p1205_p13 = pmov %p1204_p11 }
  0x7c   : > { %v270_v0 = vld [vmem:[%s227_s11] sm:$0xff]  ;;  %vm274_vm0 = vcmask 130048   ;;  %v271_v1 = vld [vmem:[%s227_s11 + $0x8] sm:$0xff]  ;;  %s269_s21 = scalar_lea.vmem [#allocation8], %s1098_s20  ;;  %s611_s28 = sshll.u32 %s930_s19, 8  ;;  %vm462_vm1 = vcmask 261120  }
  0x7d   : > { %855 = vsyncadd (%p1205_p13), [#allocation6], 4294967040  ;;  %v272_v2 = vmax.f32 %v270_v0, 0.0  ;;  %v273_v3 = vmax.f32 %v271_v1, 0.0  ;;  %v285_v11 = vld [vmem:[%s236_s12] sm:$0xff]  ;;  %v286_v12 = vld [vmem:[%s236_s12 + $0x8] sm:$0xff]  ;;  %s1132_s10 = scalar_lea.hbm %s1180_s4, %s611_s28 }
  0x7e   : > { %v372_v17 = vld [vmem:[#allocation7] sm:$0xff]  ;;  %v373_v18 = vld [vmem:[#allocation7 + $0x8] sm:$0xff]  ;;  %s479_s13 = sshll.u32 %s269_s21, 4  ;;  %s466_s2 = scalar_lea.sflag [#allocation4], %s1095_s24  ;;  %s1127_s13 = int_to_ptr.vmem [resolvable:$true] %s479_s13 }
  0x7f   : > { %v275_v4 = vsel %vm274_vm0, %v272_v2, 0.0  ;;  %624 = vmatprep.mubr.msk.f32.mxu0 %vm274_vm0, %v272_v2  ;;  %v278_v5 = vsel %vm274_vm0, %v273_v3, 0.0  ;;  %v638_v19 = vpack.c.bf16 %v373_v18, %v372_v17  ;;  %v601_v26 = vld [vmem:[%s1179_s3] ss:$0 sm:$0xff]  ;;  %s800_s6 = scalar_lea.vmem %s1127_s13, 256  ;;  %s881_s19 = smov [#allocation8]  }
  0x80   : > { %276 = vadd.xlane.f32.xlu0 %v275_v4  ;;  %p801_p3 = scmp.ne.s32.totalorder %s1127_s13, %s800_s6  ;;  %s804_s25 = sshll.u32 %s881_s19, 4  ;;  %s805_s25 = int_to_ptr.vmem [resolvable:$false] %s804_s25 }
  0x81   : > { %639 = vmatprep.subr.bf16.mxu1 %v638_v19  ;;  %s806_s29 = scalar_lea.vmem %s805_s25, 512  ;;  %p807_p1 = scmp.lt.s32.totalorder %s1127_s13, %s805_s25 }
  0x82   : > { %641 = vmatpush3.bf16.msra.mxu1 %v638_v19  ;;  %p802_p7 = pnand %p801_p3, %p1003_p12  ;;  %p808_p5 = scmp.lt.s32.totalorder %s806_s29, %s800_s6 }
  0x84   : > { %279 = vadd.xlane.f32.xlu0 %v278_v5  ;;  %p803_p9 = pneg %p802_p7  ;;  %p809_p2 = por %p808_p5, %p807_p1 }
  0x86   : > { %p810_p6 = pnand %p809_p2, %p803_p9 }
 0x10d   : > { %v277_v6 = vpop.xlane.xlu0 %276 }
 0x10e   : > { %v281_v7 = vadd.f32 1.00001, %v277_v6 }
 0x110   : > { %708 = vrsqrt.f32 %v281_v7 }
 0x111   : > { %v280_v8 = vpop.xlane.xlu0 %279 }
 0x112   : > { %v282_v9 = vadd.f32 1.00001, %v280_v8 }
 0x114   : > { %710 = vrsqrt.f32 %v282_v9 }
 0x11a   : > { %v709_v10 = vpop.eup %708 }
 0x11b   : > { %v287_v14 = vmul.f32 %v709_v10, %v285_v11 }
 0x11e   : > { %v711_v13 = vpop.eup %710 }
 0x11f   : > { %v288_v15 = vmul.f32 %v711_v13, %v286_v12 }
 0x121   : > { %v634_v16 = vpack.c.bf16 %v288_v15, %v287_v14 }
 0x123   : > { %635 = vmatprep.subr.bf16.mxu0 %v634_v16 }
 0x124   : > { %637 = vmatpush3.bf16.msra.mxu0 %v634_v16 }
 0x127   : > { %625 = vmatmul.mubr.msk.f32.vlgmr.msra.gmra.mrb[0].mxu0 %vm274_vm0, %v273_v3 }
 0x1fa   : > { %v626_v20 = vpop.f32.mrb[0].mxu0 }
 0x1fb   : > { %v367_v21 = vadd.f32 %v626_v20, %v288_v15  ;;  %v361_v22 = vpop.f32.mrb[1].mxu0 }
 0x1fc   : > { %v362_v23 = vadd.f32 %v361_v22, %v287_v14 }
 0x1fd   : > { %v371_v25 = vmul.f32 %v711_v13, %v367_v21 }
 0x1fe   : > { %v370_v24 = vmul.f32 %v709_v10, %v362_v23 }
 0x200   : > { %631 = vmatprep.mubr.msk.f32.mxu1 %vm274_vm0, %v370_v24 }
 0x201   : > { %632 = vmatmul.mubr.msk.f32.vlgmr.msra.gmra.mrb[0].mxu1 %vm274_vm0, %v371_v25 }
 0x2d4   : > { %v633_v27 = vpop.f32.mrb[0].mxu1 }
 0x2d5   : > { %v459_v28 = vadd.f32 %v633_v27, %v601_v26  ;;  %v453_v29 = vpop.f32.mrb[1].mxu1 }
 0x2d6   : > { %v454_v30 = vadd.f32 %v601_v26, %v453_v29 }
 0x2d7   : > { %464 = vst.msk [vmem:[%s269_s21 + $0x8] sm:$0xff] %vm462_vm1, %v459_v28 }
 0x2d8   : > { %463 = vst.msk [vmem:[%s269_s21] sm:$0xff] %vm462_vm1, %v454_v30 }
 0x2d9   : > { %813 = shalt.err (!%p810_p6)
}
 0x2da   : > { %s814_s0 = scalar_lea.hbm %s1132_s10, 256  ;;  %s818_s11 = scalar_lea.hbm %s1180_s4, 512 }
 0x2db   : > { %p815_p8 = scmp.ne.s32.totalorder %s1132_s10, %s814_s0  ;;  %p819_p4 = scmp.lt.u32.totalorder %s1132_s10, %s1180_s4 }
 0x2dc   : > { %p820_p11 = scmp.lt.u32.totalorder %s818_s11, %s814_s0  ;;  %p822_p3 = scmp.lt.u32.totalorder %s814_s0, %s1132_s10 }
 0x2dd   : > { %p816_p10 = pnand %p815_p8, %p1003_p12 }
 0x2de   : > { %p821_p13 = por %p820_p11, %p819_p4 }
 0x2df   : > { %p817_p0 = pneg %p816_p10 }
 0x2e0   : > { %p823_p7 = por %p822_p3, %p821_p13 }
 0x2e2   : > { %p824_p9 = pnand %p823_p7, %p817_p0 }
 0x2e4   : > { %827 = shalt.err (!%p824_p9)
}
 0x2e5   : > { %s882_s12 = smov 128   ;;  %s883_s21 = smov 8  }
 0x2e6   : > { %650 = dma.vmem_to_hbm [thread:$0]  (%p1003_p12), %s1127_s13, 256, %s1132_s10, %s466_s2, %s882_s12, %s882_s12, %s883_s21  }
 0x2e7 PF: > { %s494_s7 = sand.u32 1, %s862_s15   ;;  %p1206_p1 = scmp.ne.s32.totalorder %s1191_s22, 0 }
 0x2e8   : > { %p1207_p5 = scmp.ge.s32.totalorder %s874_s18, 2  ;;  %s495_s8 = scalar_lea.sflag [#allocation4], %s494_s7 }
 0x2ea   : > { %p664_p2 = pnand %p1207_p5, %p1206_p1 }
 0x2ec   : > { %857 = dma.done.wait (!%p664_p2), %s495_s8, 256  }
 0x2ed   : > { %859 = vsyncadd (!%p664_p2), %s495_s8, 4294967040  ;;  %s1208_s28 = sld [smem:[#allocation13_spill]]  ;;  %p20_p6 = scmp.ge.s32.totalorder %s965_s27, 4  }
 0x2ee   : > { %s1209_s15 = smov %s866_s16  ;;  %s1210_s16 = smov %s870_s17 }
 0x2ef   : > { %s1212_s18 = smov %s965_s27  ;;  %22 = sbr.rel (!%p20_p6) target bundleno = 10 (0xa), region = 98 }
 0x2f3   : > { %s1211_s17 = smov %s1208_s28 }
 0x2f6   :  { %500 = vsyncpa [#allocation3], 1 }
 0x2f7   :  { %502 = vsyncpa [#allocation3 + $0x1], 1 }
 0x2f8   :  { %503 = vsyncpa [#allocation6], 1 }
 0x2f9   :  { %505 = vsyncpa [#allocation6 + $0x1], 1 }
 0x2fa   :  { %506 = vsyncpa [#allocation4], 1 }
 0x2fb   :  { %508 = vsyncpa [#allocation4 + $0x1], 1 }

</bundles_post_ra>
